<compile_context>
chip_gen: v5e
topology: v5e:2x2
jax: 0.10.0
libtpu: 0.0.40
codegen_flags: <defaults>
</compile_context>

<pallas_src>
import jax
import jax.numpy as jnp
from jax.experimental import pallas as pl
from jax.experimental.pallas import tpu as pltpu

REL_THR = 0.7
REP_THR = 0.7


def _round_up(x, m):
    return ((x + m - 1) // m) * m


def _vmem_capacity_bytes():
    """Per-TensorCore VMEM capacity; falls back to 128 MiB (v5e/v6e)."""
    try:
        return int(pltpu.get_tpu_info().vmem_capacity_bytes)
    except Exception:  # no TPU visible at trace time / older jax
        return 128 << 20


def _pick_tile_rows(h, w, vmem_bytes):
    """Rows per grid step.

    Working set per step ~= 9x one f32 input tile:
      2x double-buffered (rep + rel) f32 input tiles  -> 4 tiles
      2x double-buffered int8 output tiles            -> ~0.5 tiles
      ~4 live full-tile f32 Mosaic temporaries        -> 4 tiles
    so one f32 tile gets ~ (0.75 * VMEM) / 9 bytes:
      v5e/v6e (128 MiB)  -> 8 MiB tiles (capped; >8 MiB is <1% extra roofline)
      v7x (64 MiB / TC)  -> ~5 MiB tiles (working set ~45 MiB per core)
    """
    tile_budget = min((vmem_bytes * 3 // 4) // 9, 8 << 20)
    th = tile_budget // (4 * max(w, 1))
    th = min(th, 1024)
    if h > 64:
        # Guarantee >= 2 row tiles so ("parallel",) can use both v7x TCs.
        th = min(th, _round_up((h + 1) // 2, 32))
    th = max(32, (th // 32) * 32)          # int8 out tile: sublane multiple of 32
    return min(th, _round_up(h, 32))


def nms_maxima_mask(repeatability, reliability):
    """(1, 1, H, W) float32 maps -> (H, W_pad) int8 maxima mask.

    W_pad is W rounded up to a multiple of 128; padded columns are always 0
    in the mask (rep is padded with -inf and fails the threshold), so index
    extraction on the padded mask is identical to the unpadded one.
    """
    rep2d = repeatability[0, 0]
    rel2d = reliability[0, 0]
    h, w_in = rep2d.shape

    # Lane-dense output: pad W to a lane multiple so the int8 writeback uses
    # unmasked vst (and lane rolls stay aligned to the (8,128) vreg layout).
    w = _round_up(w_in, 128)
    if w != w_in:
        rep2d = jnp.pad(rep2d, ((0, 0), (0, w - w_in)),
                        constant_values=-jnp.inf)
        rel2d = jnp.pad(rel2d, ((0, 0), (0, w - w_in)),
                        constant_values=-jnp.inf)

    vmem_bytes = _vmem_capacity_bytes()
    th = _pick_tile_rows(h, w, vmem_bytes)
    th8 = th // 8
    num_tiles = int(pl.cdiv(h, th))
    last_blk8 = int(pl.cdiv(h, 8)) - 1
    ragged = (h % th) != 0

    # Scalar-prefetched (SMEM) indices of the 8-row blocks holding the row
    # just above / just below each row tile (clamped in range; the kernel
    # replaces them with -inf at the top/bottom image borders).
    tile_ids = jnp.arange(num_tiles, dtype=jnp.int32)
    top_blk = jnp.maximum(tile_ids * th8 - 1, 0).astype(jnp.int32)
    bot_blk = jnp.minimum((tile_ids + 1) * th8, last_blk8).astype(jnp.int32)

    def kernel(top_blk_ref, bot_blk_ref, rep_ref, top_ref, bot_ref, rel_ref,
               out_ref):
        del top_blk_ref, bot_blk_ref        # only used by the index_maps
        i = pl.program_id(0)
        neg_inf = jnp.float32(-jnp.inf)

        rep = rep_ref[...]                  # (th, w) f32
        rel = rel_ref[...]

        lrow = jax.lax.broadcasted_iota(jnp.int32, (th, w), 0)
        col = jax.lax.broadcasted_iota(jnp.int32, (th, w), 1)

        # Pooling input: rows past the image bottom -> -inf, but only emit
        # this mask when the row grid is actually ragged.
        if ragged:
            x = jnp.where(lrow < h - i * th, rep, neg_inf)
        else:
            x = rep

        def colmax3(v, cidx):
            # max over (c-1, c, c+1) with -inf outside the image; lane rolls
            # run on the XLU so they do not eat VPU slots.
            left = jnp.where(cidx == 0, neg_inf, pltpu.roll(v, shift=1, axis=1))
            right = jnp.where(cidx == w - 1, neg_inf,
                              pltpu.roll(v, shift=w - 1, axis=1))
            return jnp.maximum(v, jnp.maximum(left, right))

        cm = colmax3(x, col)                # (th, w) column-wise 3-max

        # Halo rows (row just above / below this tile), column-maxed too.
        col1 = jax.lax.broadcasted_iota(jnp.int32, (1, w), 1)
        top_row = top_ref[7:8, :]           # global row i*th - 1   (if i > 0)
        bot_row = bot_ref[0:1, :]           # global row (i+1)*th   (if < h)
        top_cm = jnp.where(i > 0, colmax3(top_row, col1), neg_inf)
        bot_cm = jnp.where((i + 1) * th < h, colmax3(bot_row, col1), neg_inf)

        # Vertical max over (r-1, r, r+1): sublane rolls (XLU) + halo splice.
        up = jnp.where(lrow == 0, top_cm, pltpu.roll(cm, shift=1, axis=0))
        down = jnp.where(lrow == th - 1, bot_cm,
                         pltpu.roll(cm, shift=th - 1, axis=0))
        m = jnp.maximum(cm, jnp.maximum(up, down))   # == MaxPool2d(3, 1, 1)

        passes = jnp.logical_and(rep >= REP_THR, rel >= REL_THR)
        out_ref[...] = jnp.logical_and(rep == m, passes).astype(jnp.int8)

    grid_spec = pltpu.PrefetchScalarGridSpec(
        num_scalar_prefetch=2,
        grid=(num_tiles,),
        in_specs=[
            pl.BlockSpec((th, w), lambda i, tb, bb: (i, 0)),      # rep tile
            pl.BlockSpec((8, w), lambda i, tb, bb: (tb[i], 0)),   # top halo
            pl.BlockSpec((8, w), lambda i, tb, bb: (bb[i], 0)),   # bottom halo
            pl.BlockSpec((th, w), lambda i, tb, bb: (i, 0)),      # rel tile
        ],
        out_specs=pl.BlockSpec((th, w), lambda i, tb, bb: (i, 0)),
    )

    # Explicit scoped-VMEM limit: ~75% of per-core capacity
    # (96 MiB on v5e/v6e, 48 MiB on v7x) so the larger tiles always fit
    # double-buffered without relying on the 16/32 MiB defaults.
    vmem_limit = int(min(max(vmem_bytes * 3 // 4, 32 << 20), 100 << 20))

    # Bandwidth-dominated custom call: two f32 reads + one int8 write per
    # element plus the 16-row halo re-read per tile.
    bytes_accessed = int(2 * h * w * 4 + h * w + num_tiles * 2 * 8 * w * 4)
    cost = pl.CostEstimate(flops=0, transcendentals=0,
                           bytes_accessed=bytes_accessed)

    return pl.pallas_call(
        kernel,
        out_shape=jax.ShapeDtypeStruct((h, w), jnp.int8),
        grid_spec=grid_spec,
        compiler_params=pltpu.CompilerParams(
            dimension_semantics=("parallel",),
            vmem_limit_bytes=vmem_limit),
        cost_estimate=cost,
    )(top_blk, bot_blk, rep2d, rep2d, rep2d, rel2d)


def non_max_suppression(reliability, repeatability, max_keypoints=None):
    """Mirror of NonMaxSuppression.forward.

    reliability / repeatability: length-1 lists of (1, 1, H, W) arrays.
    Returns a (2, K) array of (row, col) indices of the surviving maxima,
    i.e. maxima.nonzero().t()[2:4] of the PyTorch module.

    If max_keypoints is given, the extraction uses a size-bounded nonzero
    (jit-friendly, padded with -1); by default the exact data-dependent
    shape is returned, matching the PyTorch semantics.
    """
    assert len(reliability) == len(repeatability) == 1, \
        'shape of reliability and repeatability are not the same'
    rel = reliability[0]
    rep = repeatability[0]

    mask = nms_maxima_mask(rep, rel)

    # TODO(synk): nonzero has a data-dependent output shape, so the index
    # extraction stays in plain JAX rather than inside the Pallas kernel.
    if max_keypoints is None:
        ys, xs = jnp.nonzero(mask)
    else:
        ys, xs = jnp.nonzero(mask, size=max_keypoints, fill_value=-1)
    return jnp.stack([ys, xs], axis=0)


if __name__ == "__main__":
    key = jax.random.PRNGKey(0)
    k_rel, k_rep = jax.random.split(key)
    H, W = 128, 128   # small lane-aligned demo shape -> 2 row tiles (halo path)

    reliability = [jax.random.uniform(k_rel, (1, 1, H, W), dtype=jnp.float32)]
    repeatability = [jax.random.uniform(k_rep, (1, 1, H, W), dtype=jnp.float32)]

    out = non_max_suppression(reliability, repeatability)
    jax.block_until_ready(out)
    print("KERNEL_OK")
</pallas_src>

<mosaic_0001>
module attributes {stable_mosaic.version = 11 : i64} {
  func.func @kernel(%arg0: i32, %arg1: memref<2xi32, #tpu.memory_space<smem>>, %arg2: memref<2xi32, #tpu.memory_space<smem>>, %arg3: memref<64x128xf32, #tpu.memory_space<vmem>>, %arg4: memref<8x128xf32, #tpu.memory_space<vmem>>, %arg5: memref<8x128xf32, #tpu.memory_space<vmem>>, %arg6: memref<64x128xf32, #tpu.memory_space<vmem>>, %arg7: memref<64x128xi8, #tpu.memory_space<vmem>>) attributes {dimension_semantics = [#tpu.dimension_semantics<parallel>], iteration_bounds = array<i64: 2>, scalar_prefetch = 2 : i64, scratch_operands = 0 : i64, tpu.core_type = #tpu.core_type<tc>, window_params = [{transform_indices = @transform_0, window_bounds = array<i64: 64, 128>}, {transform_indices = @transform_1, window_bounds = array<i64: 8, 128>}, {transform_indices = @transform_2, window_bounds = array<i64: 8, 128>}, {transform_indices = @transform_3, window_bounds = array<i64: 64, 128>}, {transform_indices = @transform_4, window_bounds = array<i64: 64, 128>}]} {
    %c0 = arith.constant 0 : index
    %c0_0 = arith.constant 0 : index
    %0 = vector.load %arg3[%c0, %c0_0] : memref<64x128xf32, #tpu.memory_space<vmem>>, vector<64x128xf32>
    %c0_1 = arith.constant 0 : index
    %c0_2 = arith.constant 0 : index
    %1 = vector.load %arg6[%c0_1, %c0_2] : memref<64x128xf32, #tpu.memory_space<vmem>>, vector<64x128xf32>
    %2 = tpu.iota {dimensions = array<i32: 0>} : vector<64x128xi32>
    %3 = tpu.iota {dimensions = array<i32: 1>} : vector<64x128xi32>
    %c0_i32 = arith.constant 0 : i32
    %4 = vector.broadcast %c0_i32 : i32 to vector<64x128xi32>
    %5 = arith.cmpi eq, %3, %4 : vector<64x128xi32>
    %c1_i32 = arith.constant 1 : i32
    %6 = tpu.dynamic_rotate %0 by %c1_i32 dim 1 : vector<64x128xf32>, i32 -> vector<64x128xf32>
    %cst = arith.constant 0xFF800000 : f32
    %7 = vector.broadcast %cst : f32 to vector<64x128xf32>
    %8 = arith.select %5, %7, %6 : vector<64x128xi1>, vector<64x128xf32>
    %c127_i32 = arith.constant 127 : i32
    %9 = vector.broadcast %c127_i32 : i32 to vector<64x128xi32>
    %10 = arith.cmpi eq, %3, %9 : vector<64x128xi32>
    %c127_i32_3 = arith.constant 127 : i32
    %11 = tpu.dynamic_rotate %0 by %c127_i32_3 dim 1 : vector<64x128xf32>, i32 -> vector<64x128xf32>
    %cst_4 = arith.constant 0xFF800000 : f32
    %12 = vector.broadcast %cst_4 : f32 to vector<64x128xf32>
    %13 = arith.select %10, %12, %11 : vector<64x128xi1>, vector<64x128xf32>
    %14 = arith.maximumf %8, %13 : vector<64x128xf32>
    %15 = arith.maximumf %0, %14 : vector<64x128xf32>
    %16 = tpu.iota {dimensions = array<i32: 1>} : vector<1x128xi32>
    %c7 = arith.constant 7 : index
    %c0_5 = arith.constant 0 : index
    %17 = vector.load %arg4[%c7, %c0_5] : memref<8x128xf32, #tpu.memory_space<vmem>>, vector<1x128xf32>
    %c0_6 = arith.constant 0 : index
    %c0_7 = arith.constant 0 : index
    %18 = vector.load %arg5[%c0_6, %c0_7] : memref<8x128xf32, #tpu.memory_space<vmem>>, vector<1x128xf32>
    %c0_i32_8 = arith.constant 0 : i32
    %19 = arith.cmpi sgt, %arg0, %c0_i32_8 : i32
    %c0_i32_9 = arith.constant 0 : i32
    %20 = vector.broadcast %c0_i32_9 : i32 to vector<1x128xi32>
    %21 = arith.cmpi eq, %16, %20 : vector<1x128xi32>
    %c1_i32_10 = arith.constant 1 : i32
    %22 = tpu.dynamic_rotate %17 by %c1_i32_10 dim 1 : vector<1x128xf32>, i32 -> vector<1x128xf32>
    %cst_11 = arith.constant 0xFF800000 : f32
    %23 = vector.broadcast %cst_11 : f32 to vector<1x128xf32>
    %24 = arith.select %21, %23, %22 : vector<1x128xi1>, vector<1x128xf32>
    %c127_i32_12 = arith.constant 127 : i32
    %25 = vector.broadcast %c127_i32_12 : i32 to vector<1x128xi32>
    %26 = arith.cmpi eq, %16, %25 : vector<1x128xi32>
    %c127_i32_13 = arith.constant 127 : i32
    %27 = tpu.dynamic_rotate %17 by %c127_i32_13 dim 1 : vector<1x128xf32>, i32 -> vector<1x128xf32>
    %cst_14 = arith.constant 0xFF800000 : f32
    %28 = vector.broadcast %cst_14 : f32 to vector<1x128xf32>
    %29 = arith.select %26, %28, %27 : vector<1x128xi1>, vector<1x128xf32>
    %30 = arith.maximumf %24, %29 : vector<1x128xf32>
    %31 = arith.maximumf %17, %30 : vector<1x128xf32>
    %cst_15 = arith.constant 0xFF800000 : f32
    %32 = vector.broadcast %cst_15 : f32 to vector<1x128xf32>
    %33 = arith.select %19, %31, %32 : vector<1x128xf32>
    %c1_i32_16 = arith.constant 1 : i32
    %34 = arith.addi %arg0, %c1_i32_16 : i32
    %c64_i32 = arith.constant 64 : i32
    %35 = arith.muli %34, %c64_i32 : i32
    %c128_i32 = arith.constant 128 : i32
    %36 = arith.cmpi slt, %35, %c128_i32 : i32
    %c0_i32_17 = arith.constant 0 : i32
    %37 = vector.broadcast %c0_i32_17 : i32 to vector<1x128xi32>
    %38 = arith.cmpi eq, %16, %37 : vector<1x128xi32>
    %c1_i32_18 = arith.constant 1 : i32
    %39 = tpu.dynamic_rotate %18 by %c1_i32_18 dim 1 : vector<1x128xf32>, i32 -> vector<1x128xf32>
    %cst_19 = arith.constant 0xFF800000 : f32
    %40 = vector.broadcast %cst_19 : f32 to vector<1x128xf32>
    %41 = arith.select %38, %40, %39 : vector<1x128xi1>, vector<1x128xf32>
    %c127_i32_20 = arith.constant 127 : i32
    %42 = vector.broadcast %c127_i32_20 : i32 to vector<1x128xi32>
    %43 = arith.cmpi eq, %16, %42 : vector<1x128xi32>
    %c127_i32_21 = arith.constant 127 : i32
    %44 = tpu.dynamic_rotate %18 by %c127_i32_21 dim 1 : vector<1x128xf32>, i32 -> vector<1x128xf32>
    %cst_22 = arith.constant 0xFF800000 : f32
    %45 = vector.broadcast %cst_22 : f32 to vector<1x128xf32>
    %46 = arith.select %43, %45, %44 : vector<1x128xi1>, vector<1x128xf32>
    %47 = arith.maximumf %41, %46 : vector<1x128xf32>
    %48 = arith.maximumf %18, %47 : vector<1x128xf32>
    %cst_23 = arith.constant 0xFF800000 : f32
    %49 = vector.broadcast %cst_23 : f32 to vector<1x128xf32>
    %50 = arith.select %36, %48, %49 : vector<1x128xf32>
    %c0_i32_24 = arith.constant 0 : i32
    %51 = vector.broadcast %c0_i32_24 : i32 to vector<64x128xi32>
    %52 = arith.cmpi eq, %2, %51 : vector<64x128xi32>
    %c1_i32_25 = arith.constant 1 : i32
    %53 = tpu.dynamic_rotate %15 by %c1_i32_25 dim 0 : vector<64x128xf32>, i32 -> vector<64x128xf32>
    %54 = vector.shape_cast %33 : vector<1x128xf32> to vector<1x128xf32>
    %55 = vector.broadcast %54 : vector<1x128xf32> to vector<64x128xf32>
    %56 = arith.select %52, %55, %53 : vector<64x128xi1>, vector<64x128xf32>
    %c63_i32 = arith.constant 63 : i32
    %57 = vector.broadcast %c63_i32 : i32 to vector<64x128xi32>
    %58 = arith.cmpi eq, %2, %57 : vector<64x128xi32>
    %c63_i32_26 = arith.constant 63 : i32
    %59 = tpu.dynamic_rotate %15 by %c63_i32_26 dim 0 : vector<64x128xf32>, i32 -> vector<64x128xf32>
    %60 = vector.shape_cast %50 : vector<1x128xf32> to vector<1x128xf32>
    %61 = vector.broadcast %60 : vector<1x128xf32> to vector<64x128xf32>
    %62 = arith.select %58, %61, %59 : vector<64x128xi1>, vector<64x128xf32>
    %63 = arith.maximumf %56, %62 : vector<64x128xf32>
    %64 = arith.maximumf %15, %63 : vector<64x128xf32>
    %cst_27 = arith.constant 0.699999988 : f32
    %65 = vector.broadcast %cst_27 : f32 to vector<64x128xf32>
    %66 = arith.cmpf oge, %0, %65 : vector<64x128xf32>
    %cst_28 = arith.constant 0.699999988 : f32
    %67 = vector.broadcast %cst_28 : f32 to vector<64x128xf32>
    %68 = arith.cmpf oge, %1, %67 : vector<64x128xf32>
    %69 = arith.andi %66, %68 : vector<64x128xi1>
    %70 = arith.cmpf oeq, %0, %64 : vector<64x128xf32>
    %71 = arith.andi %70, %69 : vector<64x128xi1>
    %72 = arith.extui %71 : vector<64x128xi1> to vector<64x128xi8>
    %c0_29 = arith.constant 0 : index
    %c0_30 = arith.constant 0 : index
    %73 = vector.load %arg7[%c0_29, %c0_30] : memref<64x128xi8, #tpu.memory_space<vmem>>, vector<64x128xi8>
    tpu.vector_store %arg7[%c0_29, %c0_30], %72 {strides = array<i32>} : memref<64x128xi8, #tpu.memory_space<vmem>>, vector<64x128xi8>,
    return
  }
  func.func @transform_0(%arg0: i32, %arg1: memref<2xi32, #tpu.memory_space<smem>>, %arg2: memref<2xi32, #tpu.memory_space<smem>>) -> (i32, i32) {
    %c0_i32 = arith.constant 0 : i32
    %c0_i32_0 = arith.constant 0 : i32
    return %arg0, %c0_i32 : i32, i32
  }
  func.func @transform_1(%arg0: i32, %arg1: memref<2xi32, #tpu.memory_space<smem>>, %arg2: memref<2xi32, #tpu.memory_space<smem>>) -> (i32, i32) {
    %0 = arith.index_cast %arg0 : i32 to index
    %1 = memref.load %arg1[%0] : memref<2xi32, #tpu.memory_space<smem>>
    %c0_i32 = arith.constant 0 : i32
    %c0_i32_0 = arith.constant 0 : i32
    return %1, %c0_i32 : i32, i32
  }
  func.func @transform_2(%arg0: i32, %arg1: memref<2xi32, #tpu.memory_space<smem>>, %arg2: memref<2xi32, #tpu.memory_space<smem>>) -> (i32, i32) {
    %0 = arith.index_cast %arg0 : i32 to index
    %1 = memref.load %arg2[%0] : memref<2xi32, #tpu.memory_space<smem>>
    %c0_i32 = arith.constant 0 : i32
    %c0_i32_0 = arith.constant 0 : i32
    return %1, %c0_i32 : i32, i32
  }
  func.func @transform_3(%arg0: i32, %arg1: memref<2xi32, #tpu.memory_space<smem>>, %arg2: memref<2xi32, #tpu.memory_space<smem>>) -> (i32, i32) {
    %c0_i32 = arith.constant 0 : i32
    %c0_i32_0 = arith.constant 0 : i32
    return %arg0, %c0_i32 : i32, i32
  }
  func.func @transform_4(%arg0: i32, %arg1: memref<2xi32, #tpu.memory_space<smem>>, %arg2: memref<2xi32, #tpu.memory_space<smem>>) -> (i32, i32) {
    %c0_i32 = arith.constant 0 : i32
    %c0_i32_0 = arith.constant 0 : i32
    return %arg0, %c0_i32 : i32, i32
  }
}

</mosaic_0001>

<bundles_post_ra>
// kernel: tpu_custom_call.1
= control target key start
LH: loop header
LB: loop body
LE: loop exit
PB: predicated region body
PF: predicated region fallthrough
CT: control target
= control target key end

     0   :  { %s1211_s27 = smov [#allocation3]   ;;  %s1212_s28 = smov [#allocation4]   ;;  %s1954_s0 = inlined_call_operand.hbm [shape: s32[2], index: 0, kind: input, shape index: {}]   ;;  %s1955_s2 = inlined_call_operand.hbm [shape: f32[128,128], index: 2, kind: input, shape index: {}]   ;;  %s1956_s3 = inlined_call_operand.hbm [shape: f32[128,128], index: 3, kind: input, shape index: {}]   ;;  %s1957_s4 = inlined_call_operand.hbm [shape: f32[128,128], index: 4, kind: input, shape index: {}]   ;;  %s1958_s5 = inlined_call_operand.hbm [shape: f32[128,128], index: 5, kind: input, shape index: {}]   ;;  %s1959_s6 = inlined_call_operand.hbm [shape: s8[128,128], index: 6, kind: output, shape index: {}]   ;;  %s1960_s1 = inlined_call_operand.hbm [shape: s32[2], index: 1, kind: input, shape index: {}]  }
   0x1   :  { %1979 = sst [smem:[#allocation33_spill]] %s1955_s2  ;;  %s12_s23 = sshll.u32 %s1954_s0, 4  ;;  %s13_s23 = int_to_ptr.hbm [resolvable:$true] %s12_s23 }
   0x2   :  { %1980 = sst [smem:[#allocation34_spill]] %s1956_s3  ;;  %s17_s26 = sshll.u32 %s1960_s1, 4  ;;  %s18_s26 = int_to_ptr.hbm [resolvable:$true] %s17_s26 }
   0x3   :  { %1981 = sst [smem:[#allocation35_spill]] %s1959_s6 }
   0x4   :  { %15 = dma.hbm_to_smem %s13_s23, 16, %s1211_s27, [#allocation2] }
   0x5   :  { %20 = dma.hbm_to_smem %s18_s26, 16, %s1212_s28, [#allocation2] }
   0x6   :  { %1149 = dma.done.wait [#allocation2], 32 }
   0x7   :  { %1150 = vsyncadd [#allocation2], 4294967264 }
   0x8   :  { %23 = sfence }
   0x9   :  { %24 = vsyncpa [#allocation6], 0 }
   0xa   :  { %26 = vsyncpa [#allocation6 + $0x1], 0 }
   0xb   :  { %27 = vsyncpa [#allocation9], 0 }
   0xc   :  { %29 = vsyncpa [#allocation9 + $0x1], 0 }
   0xd   :  { %30 = vsyncpa [#allocation12], 0 }
   0xe   :  { %32 = vsyncpa [#allocation12 + $0x1], 0 }
   0xf   :  { %33 = vsyncpa [#allocation7], 0 }
  0x10   :  { %35 = vsyncpa [#allocation7 + $0x1], 0  ;;  %s1261_s0 = smov 0   ;;  %s1263_s1 = smov 0  }
  0x11   :  { %s1265_s29 = smov 0   ;;  %s1267_s30 = smov 0  }
  0x12   :  { %s1269_s7 = smov 0   ;;  %s1271_s8 = smov 0  }
  0x13   :  { %s1273_s9 = smov 0   ;;  %s1275_s10 = smov 0  }
  0x14   :  { %s1277_s11 = smov 0   ;;  %s1279_s12 = smov 0  }
  0x15 LB: > { %1982 = sst [smem:[#allocation24_spill]] %s1193_s8  ;;  %s1310_s13 = sadd.s32 4294967295, %s1209_s12   ;;  %s1209_s12 = sphi %s1279_s12, %s2060_s12   ;;  %s1205_s11 = sphi %s1277_s11, %s2073_s11   ;;  %s1201_s10 = sphi %s1275_s10, %s2072_s10   ;;  %s1197_s9 = sphi %s1273_s9, %s2071_s9   ;;  %s1193_s8 = sphi %s1271_s8, %s2063_s8   ;;  %s1189_s7 = sphi %s1269_s7, %s2070_s7   ;;  %s1185_s30 = sphi %s1267_s30, %s2069_s30   ;;  %s1181_s29 = sphi %s1265_s29, %s2068_s29   ;;  %s1177_s1 = sphi %s1263_s1, %s2067_s1   ;;  %s1173_s0 = sphi %s1261_s0, %s2066_s0  }
  0x16   : > { %1983 = sst [smem:[#allocation25_spill]] %s1197_s9  ;;  %s1313_s14 = sadd.s32 1, %s1209_s12  }
  0x17   : > { %1984 = sst [smem:[#allocation26_spill]] %s1205_s11  ;;  %p1968_p0 = scmp.eq.s32.totalorder %s1209_s12, 0 }
  0x18   : > { %1985 = sst [smem:[#allocation27_spill]] %s1313_s14  ;;  %p1965_p1 = scmp.eq.s32.totalorder %s1310_s13, 0 }
  0x19   : > { %s71_s15 = sld [smem:[#allocation3 + %s1209_s12]]  ;;  %s76_s16 = sadd.s32 1, %s1193_s8 }
  0x1a   : > { %s72_s17 = sld [smem:[#allocation3 + %s1313_s14]]  ;;  %p83_p2 = scmp.ne.s32.totalorder %s1193_s8, %s1189_s7 }
  0x1b   : > { %p89_p3 = scmp.ne.s32.totalorder %s1189_s7, %s1185_s30  ;;  %p1964_p6 = scmp.lt.s32.totalorder %s1209_s12, 2 }
  0x1c   : > { %p1326_p5 = por %p83_p2, %p1968_p0  ;;  %s215_s20 = sand.u32 1, %s1209_s12  }
  0x1d   : > { %p1333_p7 = por %p89_p3, %p1965_p1  ;;  %s217_s21 = sand.u32 1, %s1193_s8  }
  0x1e   : > { %s787_s22 = sshll.u32 %s217_s21, 3  ;;  %p1343_p8 = pnand %p1964_p6, %p1326_p5 }
  0x1f   : > { %s219_s25 = scalar_lea.vmem [#allocation8], %s787_s22  ;;  %p794_p10 = scmp.ge.s32.totalorder %s1209_s12, 1 }
  0x20   : > { %s73_s24 = ssub.s32 %s71_s15, %s72_s17  ;;  %s1347_s26 = sshll.u32 %s219_s25, 4 }
  0x21   : > { %p74_p9 = scmp.eq.s32.totalorder %s73_s24, 0  ;;  %1989 = sst [smem:[#allocation28_spill]] %s1347_s26 }
  0x22   : > { %s812_s27 = scalar_select %p1326_p5, [#allocation3], [#allocation14] }
  0x23   : > { %s1352_s28 = scalar_select %p74_p9, %s1193_s8, %s76_s16  }
  0x24   : > { %s813_s30 = scalar_select %p1326_p5, %s1209_s12, 0 }
  0x25   : > { %1990 = sst [smem:[#allocation29_spill]] %s1352_s28  ;;  %s2075_s27 = smov (!%p1964_p6, %s812_s27), [#allocation16] }
  0x26   : > { %s2077_s30 = smov (!%p1964_p6, %s813_s30), 0  ;;  %p275_p11 = scmp.lt.s32.totalorder %s1209_s12, 3 }
  0x27   : > { %s220_s15 = sld [smem:[%s2075_s27 + %s2077_s30]]  ;;  %s781_s16 = sadd.s32 4294967294, %s1209_s12  }
  0x28   : > { %p1364_p12 = pnand %p794_p10, %p275_p11  ;;  %s45_s18 = ssub.s32 %s1209_s12, %s1313_s14 }
  0x29   : > { %p1371_p13 = scmp.eq.s32.totalorder %s45_s18, 0  ;;  %s1993_s3 = sld [smem:[#allocation34_spill]] }
  0x2a   : > { %s48_s26 = sadd.s32 1, %s1205_s11  ;;  %p55_p2 = scmp.ne.s32.totalorder %s1205_s11, %s1201_s10 }
  0x2b   : > { %s1383_s30 = scalar_lea.sflag [#allocation9], %s215_s20  ;;  %p965_p9 = pneg %p1343_p8 }
  0x2d   : > { %s788_s21 = sshll.u32 %s220_s15, 3 }
  0x2f   : > { %s224_s28 = scalar_lea.hbm %s1993_s3, %s788_s21  ;;  %s968_s24 = scalar_lea.hbm %s1993_s3, 128 }
  0x30   : > { %s226_s27 = sshll.u32 %s224_s28, 4  ;;  %s227_s27 = int_to_ptr.hbm [resolvable:$true] %s226_s27 }
  0x31   : > { %s961_s8 = sshra.s32 %s227_s27, 4  ;;  %s962_s8 = int_to_ptr.hbm [resolvable:$true] %s961_s8 }
  0x32   : > { %s963_s6 = scalar_lea.hbm %s962_s8, 8  ;;  %p969_p4 = scmp.lt.s32.totalorder %s962_s8, %s1993_s3 }
  0x33   : > { %p964_p5 = scmp.ne.s32.totalorder %s962_s8, %s963_s6  ;;  %p970_p6 = scmp.lt.s32.totalorder %s968_s24, %s963_s6 }
  0x35   : > { %p966_p10 = pnand %p965_p9, %p964_p5  ;;  %p971_p1 = por %p970_p6, %p969_p4 }
  0x37   : > { %p967_p11 = pneg %p966_p10 }
  0x39   : > { %p972_p3 = pnand %p971_p1, %p967_p11 }
  0x3b   : > { %975 = shalt.err (!%p972_p3)
}
  0x3c   : > { %s1994_s20 = sld [smem:[#allocation28_spill]]  ;;  %p1408_p1 = por %p1968_p0, %p55_p2 }
  0x3d   : > { %s1401_s6 = scalar_select %p1371_p13, %s1205_s11, %s48_s26  }
  0x3e   : > { %p1998_p4 = scmp.ne.s32.totalorder %s1201_s10, %s1197_s9  ;;  %p1999_p6 = scmp.eq.s32.totalorder %s1310_s13, 0 }
  0x3f   : > { %1996 = sst [smem:[#allocation30_spill]] %s1401_s6  ;;  %p167_p5 = scmp.eq.s32.totalorder %s1310_s13, 1 }
  0x40   : > { %p1417_p3 = por %p1999_p6, %p1998_p4  ;;  %p173_p9 = scmp.eq.s32.totalorder %s781_s16, 1 }
  0x41   : > { %s1972_s26 = sshll.u32 %s1209_s12, 6  ;;  %p2003_p13 = pmov %p1998_p4 }
  0x42   : > { %s1995_s28 = int_to_ptr.vmem [resolvable:$true] %s1994_s20  ;;  %s2006_s2 = sld [smem:[#allocation33_spill]] }
  0x43   : > { %833 = dma.hbm_to_vmem [thread:$0]  (!%p1343_p8), %s227_s27, 128, %s1995_s28, %s1383_s30  }
  0x44   : > { %s1423_s27 = sand.u32 1, %s1205_s11   ;;  %p1429_p8 = por %p167_p5, %p55_p2 }
  0x45   : > { %p1436_p10 = por %p173_p9, %p2003_p13  ;;  %s1969_s18 = sshll.u32 %s1423_s27, 6 }
  0x46   : > { %s2001_s22 = scalar_select %p1429_p8, 1, 0 }
  0x47   : > { %s2004_s15 = scalar_select %p1436_p10, 1, 0 }
  0x48   : > { %2002 = sst [smem:[#allocation28_spill]] %s2001_s22  ;;  %s202_s21 = scalar_lea.hbm %s2006_s2, %s1972_s26 }
  0x49   : > { %2005 = sst [smem:[#allocation31_spill]] %s2004_s15  ;;  %s203_s25 = sshll.u32 %s202_s21, 4  ;;  %s204_s25 = int_to_ptr.hbm [resolvable:$true] %s203_s25 }
  0x4a   : > { %s197_s20 = scalar_lea.vmem [#allocation5], %s1969_s18  ;;  %p2007_p2 = scmp.lt.s32.totalorder %s1209_s12, 2 }
  0x4b   : > { %s205_s28 = sshll.u32 %s197_s20, 4  ;;  %s194_s6 = scalar_lea.sflag [#allocation6], %s1423_s27  ;;  %s206_s28 = int_to_ptr.vmem [resolvable:$true] %s205_s28 }
  0x4c   : > { %p1452_p11 = pnand %p2007_p2, %p1408_p1  ;;  %s991_s11 = sshra.s32 %s204_s25, 4  ;;  %s992_s11 = int_to_ptr.hbm [resolvable:$true] %s991_s11 }
  0x4d   : > { %s993_s15 = scalar_lea.hbm %s992_s11, 64  ;;  %s998_s16 = scalar_lea.hbm %s2006_s2, 128 }
  0x4e   : > { %p994_p4 = scmp.ne.s32.totalorder %s992_s11, %s993_s15  ;;  %p995_p6 = pneg %p1452_p11 }
  0x4f   : > { %p999_p1 = scmp.lt.s32.totalorder %s992_s11, %s2006_s2  ;;  %p1000_p13 = scmp.lt.s32.totalorder %s998_s16, %s993_s15 }
  0x50   : > { %p996_p5 = pnand %p995_p6, %p994_p4 }
  0x51   : > { %p1001_p2 = por %p1000_p13, %p999_p1 }
  0x52   : > { %p997_p9 = pneg %p996_p5 }
  0x54   : > { %p1002_p0 = pnand %p1001_p2, %p997_p9 }
  0x56   : > { %1005 = shalt.err (!%p1002_p0)
}
  0x57   : > { %s1970_s18 = smov 128   ;;  %s1971_s24 = smov 8  }
  0x58   : > { %828 = dma.hbm_to_vmem [thread:$0]  (!%p1452_p11), %s204_s25, 1024, %s206_s28, %s194_s6, %s1970_s18, %s1970_s18, %s1971_s24  }
  0x59   : > { %s99_s11 = sld [smem:[#allocation4 + %s1209_s12]]  ;;  %p111_p0 = scmp.ne.s32.totalorder %s1181_s29, %s1177_s1 }
  0x5a   : > { %s100_s15 = sld [smem:[#allocation4 + %s1313_s14]]  ;;  %p117_p4 = scmp.ne.s32.totalorder %s1177_s1, %s1173_s0 }
  0x5b   : > { %s237_s8 = sand.u32 1, %s1181_s29   ;;  %p2009_p5 = scmp.eq.s32.totalorder %s1209_s12, 0 }
  0x5c   : > { %s789_s21 = sshll.u32 %s237_s8, 3  ;;  %p2011_p1 = scmp.eq.s32.totalorder %s1310_s13, 0 }
  0x5d   : > { %p1482_p9 = por %p111_p0, %p2009_p5  ;;  %s104_s20 = sadd.s32 1, %s1181_s29 }
  0x5e   : > { %p1488_p13 = por %p117_p4, %p2011_p1  ;;  %s239_s18 = scalar_lea.vmem [#allocation10], %s789_s21 }
  0x5f   : > { %s815_s25 = scalar_select %p1482_p9, [#allocation4], [#allocation15] }
  0x60   : > { %s816_s0 = scalar_select %p1482_p9, %s1209_s12, 0 }
  0x61   : > { %s101_s28 = ssub.s32 %s99_s11, %s100_s15  ;;  %s1498_s24 = sshll.u32 %s239_s18, 4  ;;  %s249_s24 = int_to_ptr.vmem [resolvable:$true] %s1498_s24 }
  0x62   : > { %p102_p2 = scmp.eq.s32.totalorder %s101_s28, 0  ;;  %p2013_p0 = scmp.lt.s32.totalorder %s1209_s12, 2 }
  0x63   : > { %s2018_s15 = sshll.u32 %s1209_s12, 6  ;;  %s2019_s14 = sshll.u32 %s1423_s27, 6 }
  0x64   : > { %s2079_s25 = smov (!%p2013_p0, %s815_s25), [#allocation17]  ;;  %p2015_p4 = pmov %p2013_p0 }
  0x65   : > { %s1503_s8 = scalar_select %p102_p2, %s1181_s29, %s104_s20  }
  0x66   : > { %s2081_s0 = smov (!%p2015_p4, %s816_s0), 0  ;;  %p2016_p5 = pmov %p2013_p0 }
  0x67   : > { %2014 = sst [smem:[#allocation32_spill]] %s1503_s8  ;;  %s264_s18 = scalar_lea.hbm %s1958_s5, %s2018_s15 }
  0x68   : > { %p1511_p1 = pnand %p2016_p5, %p1482_p9  ;;  %s240_s11 = sld [smem:[%s2079_s25 + %s2081_s0]] }
  0x69   : > { %s265_s21 = sshll.u32 %s264_s18, 4  ;;  %s259_s9 = scalar_lea.vmem [#allocation11], %s2019_s14  ;;  %s266_s21 = int_to_ptr.hbm [resolvable:$true] %s265_s21 }
  0x6a   : > { %s267_s22 = sshll.u32 %s259_s9, 4  ;;  %s256_s20 = scalar_lea.sflag [#allocation12], %s1423_s27  ;;  %s268_s22 = int_to_ptr.vmem [resolvable:$true] %s267_s22 }
  0x6b   : > { %s1021_s8 = sshra.s32 %s266_s21, 4  ;;  %s1028_s2 = scalar_lea.hbm %s1958_s5, 128  ;;  %s1022_s8 = int_to_ptr.hbm [resolvable:$true] %s1021_s8 }
  0x6c   : > { %s1023_s16 = scalar_lea.hbm %s1022_s8, 64  ;;  %p1029_p4 = scmp.lt.s32.totalorder %s1022_s8, %s1958_s5 }
  0x6d   : > { %p1024_p9 = scmp.ne.s32.totalorder %s1022_s8, %s1023_s16  ;;  %p1030_p5 = scmp.lt.s32.totalorder %s1028_s2, %s1023_s16 }
  0x6f   : > { %p1026_p2 = pnand %p1024_p9, %p995_p6  ;;  %p1031_p10 = por %p1030_p5, %p1029_p4 }
  0x71   : > { %p1027_p0 = pneg %p1026_p2 }
  0x73   : > { %p1032_p8 = pnand %p1031_p10, %p1027_p0 }
  0x75   : > { %1035 = shalt.err (!%p1032_p8)
}
  0x76   : > { %s2020_s9 = smov 8   ;;  %s2021_s14 = smov 128  }
  0x77   : > { %841 = dma.hbm_to_vmem [thread:$0]  (!%p1452_p11), %s266_s21, 1024, %s268_s22, %s256_s20, %s2021_s14, %s2021_s14, %s2020_s9  }
  0x78   : > { %s790_s27 = sshll.u32 %s240_s11, 3  ;;  %p1055_p10 = pneg %p1511_p1 }
  0x79   : > { %s244_s0 = scalar_lea.hbm %s1957_s4, %s790_s27  ;;  %s1058_s22 = scalar_lea.hbm %s1957_s4, 128 }
  0x7a   : > { %s246_s15 = sshll.u32 %s244_s0, 4  ;;  %s247_s15 = int_to_ptr.hbm [resolvable:$true] %s246_s15 }
  0x7b   : > { %s1051_s8 = sshra.s32 %s247_s15, 4  ;;  %s1052_s8 = int_to_ptr.hbm [resolvable:$true] %s1051_s8 }
  0x7c   : > { %s1053_s16 = scalar_lea.hbm %s1052_s8, 8  ;;  %p1059_p11 = scmp.lt.s32.totalorder %s1052_s8, %s1957_s4 }
  0x7d   : > { %p1054_p8 = scmp.ne.s32.totalorder %s1052_s8, %s1053_s16  ;;  %p1060_p2 = scmp.lt.s32.totalorder %s1058_s22, %s1053_s16 }
  0x7f   : > { %p1056_p6 = pnand %p1055_p10, %p1054_p8  ;;  %p1061_p0 = por %p1060_p2, %p1059_p11 }
  0x81   : > { %p1057_p9 = pneg %p1056_p6 }
  0x83   : > { %p1062_p4 = pnand %p1061_p0, %p1057_p9 }
  0x85   : > { %1065 = shalt.err (!%p1062_p4)
}
  0x86   : > { %838 = dma.hbm_to_vmem [thread:$0]  (!%p1511_p1), %s247_s15, 128, %s249_s24, %s1383_s30  }
  0x87   : > { %279 = sbr.rel (%p1364_p12) target bundleno = 345 (0x159), region = 36  ;;  %s1555_s20 = sand.u32 (!%p1364_p12), 1, %s1201_s10  }
  0x88   : > { %s795_s28 = sshll.u32 (!%p1364_p12), %s1555_s20, 6  ;;  %s282_s9 = scalar_lea.sflag (!%p1364_p12), [#allocation6], %s1555_s20 }
  0x89   : > { %s1559_s14 = scalar_lea.vmem (!%p1364_p12), [#allocation5], %s795_s28 }
  0x8c   : > { %1152 = dma.done.wait (%p1417_p3), %s282_s9, 1024  }
  0x8d   : > { %1154 = vsyncadd (%p1417_p3), %s282_s9, 4294966272  ;;  %s291_s17 = sand.u32 1, %s1310_s13   ;;  %s293_s30 = sand.u32 1, %s1189_s7  }
  0x8e   : > { %s796_s26 = sshll.u32 %s293_s30, 3  ;;  %s292_s24 = scalar_lea.sflag [#allocation9], %s291_s17 }
  0x8f   : > { %s295_s27 = scalar_lea.vmem [#allocation8], %s796_s26 }
  0x90   : > { %1156 = dma.done.wait (%p1333_p7), %s292_s24, 128  }
  0x91   : > { %1158 = vsyncadd (%p1333_p7), %s292_s24, 4294967168  ;;  %s303_s18 = sand.u32 1, %s1177_s1  }
  0x92   : > { %s797_s25 = sshll.u32 %s303_s18, 3 }
  0x93   : > { %s305_s0 = scalar_lea.vmem [#allocation10], %s797_s25 }
  0x94   : > { %1160 = dma.done.wait (%p1488_p13), %s292_s24, 128  }
  0x95   : > { %1162 = vsyncadd (%p1488_p13), %s292_s24, 4294967168  ;;  %s312_s15 = scalar_lea.sflag [#allocation12], %s1555_s20  ;;  %s1577_s8 = scalar_lea.vmem [#allocation11], %s795_s28 }
  0x96   : > { %1164 = dma.done.wait (%p1417_p3), %s312_s15, 1024  }
  0x97   : > { %1166 = vsyncadd (%p1417_p3), %s312_s15, 4294966272  ;;  %v1583_v0 = vld [vmem:[%s295_s27 + $0x7] sm:$0x1]  ;;  %s1215_s19 = smov 1   ;;  %s1216_s6 = smov 127   ;;  %v1592_v2 = vld [vmem:[%s1559_s14 + $0x38] sm:$0xff]  ;;  %v379_v18 = vlaneseq }
  0x98   : > { %v1586_v1 = vld [vmem:[%s1559_s14] sm:$0xff]  ;;  %459 = vrot.lane.b32.xlu2 %v1583_v0, %s1215_s19  ;;  %v1598_v3 = vld [vmem:[%s1559_s14 + $0x8] sm:$0xff]  ;;  %v1600_v4 = vld [vmem:[%s305_s0] sm:$0x1]  ;;  %p458_p7 = scmp.gt.s32.totalorder %s1310_s13, 0  ;;  %s808_s16 = sshll.u32 %s1310_s13, 6 }
  0x99   : > { %416 = vrot.lane.b32.xlu1 %v1586_v1, %s1216_s6  ;;  %391 = vrot.lane.b32.xlu0 %v1586_v1, %s1215_s19  ;;  %v1606_v5 = vld [vmem:[%s1559_s14 + $0x20] sm:$0xff]  ;;  %v1609_v6 = vld [vmem:[%s1559_s14 + $0x18] sm:$0xff]  ;;  %v1631_v19 = vand.u32 127, %v379_v18  ;;  %v1656_v40 = vshrl.u32 %v379_v18, 7  ;;  %s809_s3 = sadd.s32 64, %s808_s16  ;;  %s799_s22 = sshll.u32 %s1555_s20, 4 }
  0x9a   : > { %v1612_v7 = vld [vmem:[%s1559_s14 + $0x10] sm:$0xff]  ;;  %v1621_v9 = vld [vmem:[%s1559_s14 + $0x28] sm:$0xff]  ;;  %s467_s23 = scalar_select %p458_p7, 1, 0  ;;  %v371_v55 = vld [vmem:[%s1577_s8] sm:$0xff] }
  0x9b   : > { %v1618_v8 = vld [vmem:[%s1559_s14 + $0x30] sm:$0xff]  ;;  %vm390_vm0 = vcmp.eq.s32.totalorder %v1631_v19, 0  ;;  %vm415_vm1 = vcmp.eq.s32.totalorder %v1631_v19, 127  ;;  %vm502_vm3 = vcmp.lt.s32.totalorder %v1656_v40, 1  ;;  %p473_p12 = scmp.lt.s32.totalorder %s809_s3, 128  ;;  %vm536_vm4 = vcmp.lt.s32.totalorder %v1656_v40, 7 }
  0x9c   : > { %v468_v33 = vstv %s467_s23  ;;  %vm486_vm5 = vcmp.eq.s32.totalorder %v1656_v40, 0  ;;  %v1696_v60 = vld [vmem:[%s1577_s8 + $0x38] sm:$0xff]  ;;  %v372_v61 = vld [vmem:[%s1577_s8 + $0x8] sm:$0xff]  ;;  %vm578_vm6 = vcmp.ge.f32.partialorder %v371_v55, 0.7  ;;  %s810_s11 = sshll.u32 %s1310_s13, 4 }
  0x9d   : > { %vm469_vm2 = vcmp.eq.s32.totalorder %v468_v33, 1  ;;  %s1691_s2 = scalar_select %p473_p12, 1, 0  ;;  %vm570_vm7 = vcmp.ge.f32.partialorder %v1586_v1, 0.7 }
  0x9e   : > { %vm577_vm8 = vcmp.ge.f32.partialorder %v1592_v2, 0.7  ;;  %vm585_vm9 = vcmp.ge.f32.partialorder %v1696_v60, 0.7  ;;  %vm579_vm10 = vcmp.ge.f32.partialorder %v372_v61, 0.7 }
  0x9f   : > { %vm571_vm11 = vcmp.ge.f32.partialorder %v1598_v3, 0.7  ;;  %vm573_vm12 = vcmp.ge.f32.partialorder %v1609_v6, 0.7  ;;  %s355_s21 = scalar_lea.vmem [#allocation13], %s799_s22  ;;  %s2052_s9 = sld [smem:[#allocation35_spill]] }
  0xa0   : > { %462 = vrot.lane.b32.xlu2 %v1583_v0, %s1216_s6  ;;  %vm1774_vm14 = vmand %vm571_vm11, %vm579_vm10  ;;  %vm2033_vm10 = vcmp.ge.f32.partialorder %v1612_v7, 0.7  ;;  %s2054_s30 = sld [smem:[#allocation28_spill]]  ;;  %s639_s26 = sshll.u32 %s355_s21, 4  ;;  %s640_s26 = int_to_ptr.vmem [resolvable:$true] %s639_s26 }
  0xa1   : > { %430 = vrot.lane.b32.xlu1 %v1592_v2, %s1216_s6  ;;  %405 = vrot.lane.b32.xlu0 %v1592_v2, %s1215_s19  ;;  %s627_s27 = scalar_lea.sflag [#allocation7], %s1555_s20 }
  0xa5   : > { %s2053_s14 = smov %s2052_s9  ;;  %s638_s17 = scalar_lea.hbm %s2052_s9, %s810_s11 }
  0xa6   : > { %s641_s24 = sshll.u32 %s638_s17, 4  ;;  %p2055_p13 = scmp.ne.s32.totalorder %s2054_s30, 0  ;;  %s642_s24 = int_to_ptr.hbm [resolvable:$true] %s641_s24 }
  0xa7   : > { %s1095_s18 = sshra.s32 %s642_s24, 4  ;;  %s1096_s18 = int_to_ptr.hbm [resolvable:$true] %s1095_s18 }
  0xa8   : > { %393 = vrot.lane.b32.xlu2 %v1598_v3, %s1215_s19  ;;  %s1097_s25 = scalar_lea.hbm %s1096_s18, 16  ;;  %p1102_p8 = scmp.lt.s32.totalorder %s1096_s18, %s2053_s14 }
  0xa9   : > { %477 = vrot.lane.b32.xlu1 %v1600_v4, %s1216_s6  ;;  %474 = vrot.lane.b32.xlu0 %v1600_v4, %s1215_s19  ;;  %p1098_p3 = scmp.ne.s32.totalorder %s1096_s18, %s1097_s25 }
  0xab   : > { %p1099_p1 = pnand %p1098_p3, %p2055_p13 }
  0xad   : > { %p1100_p5 = pneg %p1099_p1 }
  0xb0   : > { %399 = vrot.lane.b32.xlu2 %v1606_v5, %s1215_s19 }
  0xb1   : > { %397 = vrot.lane.b32.xlu1 %v1609_v6, %s1215_s19  ;;  %395 = vrot.lane.b32.xlu0 %v1612_v7, %s1215_s19 }
  0xb8   : > { %418 = vrot.lane.b32.xlu2 %v1598_v3, %s1216_s6 }
  0xb9   : > { %403 = vrot.lane.b32.xlu1 %v1618_v8, %s1215_s19  ;;  %401 = vrot.lane.b32.xlu0 %v1621_v9, %s1215_s19 }
  0xc0   : > { %424 = vrot.lane.b32.xlu2 %v1606_v5, %s1216_s6 }
  0xc1   : > { %422 = vrot.lane.b32.xlu1 %v1609_v6, %s1216_s6  ;;  %420 = vrot.lane.b32.xlu0 %v1612_v7, %s1216_s6 }
  0xc9   : > { %428 = vrot.lane.b32.xlu1 %v1618_v8, %s1216_s6  ;;  %426 = vrot.lane.b32.xlu0 %v1621_v9, %s1216_s6 }
  0xf2   : > { %v460_v10 = vpop.permute.xlu2 %459 }
  0xf3   : > { %v461_v22 = vsel %vm390_vm0, -inf, %v460_v10 }
  0xfa   : > { %v463_v11 = vpop.permute.xlu2 %462 }
  0xfb   : > { %v464_v23 = vsel %vm415_vm1, -inf, %v463_v11  ;;  %v374_v11 = vld [vmem:[%s1577_s8 + $0x18] sm:$0xff] }
  0xfc   : > { %v465_v29 = vmax.f32 %v461_v22, %v464_v23  ;;  %vm581_vm13 = vcmp.ge.f32.partialorder %v374_v11, 0.7 }
  0xfe   : > { %v466_v38 = vmax.f32 %v1583_v0, %v465_v29 }
 0x100   : > { %v470_v43 = vsel %vm469_vm2, %v466_v38, -inf }
 0x101   : > { %v511_v48 = vperm.slane %v470_v43, 0 }
 0x102   : > { %v394_v12 = vpop.permute.xlu2 %393 }
 0x103   : > { %v408_v30 = vsel %vm390_vm0, -inf, %v394_v12  ;;  %v483_v12 = vstv %s1691_s2 }
 0x104   : > { %vm1726_vm15 = vcmp.eq.s32.totalorder %v483_v12, 1 }
 0x10a   : > { %v400_v16 = vpop.permute.xlu2 %399 }
 0x10b   : > { %v417_v13 = vpop.permute.xlu1 %416  ;;  %v392_v14 = vpop.permute.xlu0 %391  ;;  %v411_v52 = vsel %vm390_vm0, -inf, %v400_v16 }
 0x10c   : > { %v432_v27 = vsel %vm415_vm1, -inf, %v417_v13  ;;  %v407_v28 = vsel %vm390_vm0, -inf, %v392_v14 }
 0x10d   : > { %v440_v34 = vmax.f32 %v407_v28, %v432_v27  ;;  %v387_v27 = vadd.s32 56, %v1656_v40 }
 0x10f   : > { %v1660_v41 = vmax.f32 %v1586_v1, %v440_v34 }
 0x111   : > { %v494_v45 = vrot.slane %v1660_v41, 7  ;;  %v528_v53 = vrot.slane %v1660_v41, 1 }
 0x112   : > { %v419_v24 = vpop.permute.xlu2 %418 }
 0x113   : > { %v431_v15 = vpop.permute.xlu1 %430  ;;  %v406_v17 = vpop.permute.xlu0 %405  ;;  %v433_v31 = vsel %vm415_vm1, -inf, %v419_v24 }
 0x114   : > { %v439_v25 = vsel %vm415_vm1, -inf, %v431_v15  ;;  %v414_v26 = vsel %vm390_vm0, -inf, %v406_v17  ;;  %v441_v36 = vmax.f32 %v408_v30, %v433_v31  ;;  %v1732_v30 = vld [vmem:[%s1577_s8 + $0x20] sm:$0xff] }
 0x115   : > { %v447_v32 = vmax.f32 %v414_v26, %v439_v25  ;;  %v373_v26 = vld [vmem:[%s1577_s8 + $0x10] sm:$0xff] }
 0x116   : > { %v1663_v42 = vmax.f32 %v1598_v3, %v441_v36 }
 0x117   : > { %v1654_v39 = vmax.f32 %v1592_v2, %v447_v32 }
 0x118   : > { %v529_v49 = vrot.slane %v1663_v42, 1 }
 0x119   : > { %v501_v44 = vrot.slane %v1654_v39, 7  ;;  %v535_v31 = vrot.slane %v1654_v39, 1 }
 0x11a   : > { %v425_v46 = vpop.permute.xlu2 %424  ;;  %v543_v56 = vsel %vm536_vm4, %v528_v53, %v529_v49 }
 0x11b   : > { %v478_v20 = vpop.permute.xlu1 %477  ;;  %v475_v21 = vpop.permute.xlu0 %474  ;;  %v510_v51 = vsel %vm502_vm3, %v501_v44, %v494_v45  ;;  %v436_v54 = vsel %vm415_vm1, -inf, %v425_v46 }
 0x11c   : > { %v512_v57 = vsel %vm486_vm5, %v511_v48, %v510_v51  ;;  %v479_v58 = vsel %vm415_vm1, -inf, %v478_v20  ;;  %v476_v59 = vsel %vm390_vm0, -inf, %v475_v21  ;;  %v444_v62 = vmax.f32 %v411_v52, %v436_v54 }
 0x11d   : > { %v554_v63 = vmax.f32 %v512_v57, %v543_v56  ;;  %v480_v0 = vmax.f32 %v476_v59, %v479_v58  ;;  %v495_v21 = vrot.slane %v1663_v42, 7  ;;  %v377_v56 = vld [vmem:[%s1577_s8 + $0x30] sm:$0xff] }
 0x11e   : > { %v1711_v17 = vmax.f32 %v1606_v5, %v444_v62 }
 0x11f   : > { %v562_v23 = vmax.f32 %v1660_v41, %v554_v63  ;;  %v481_v24 = vmax.f32 %v1600_v4, %v480_v0  ;;  %v509_v34 = vsel %vm502_vm3, %v494_v45, %v495_v21 }
 0x120   : > { %v532_v4 = vrot.slane %v1711_v17, 1 }
 0x121   : > { %vm594_vm5 = vcmp.eq.f32.partialorder %v1586_v1, %v562_v23 }
 0x123   : > { %v398_v35 = vpop.permute.xlu1 %397  ;;  %v396_v37 = vpop.permute.xlu0 %395 }
 0x124   : > { %v410_v13 = vsel %vm390_vm0, -inf, %v398_v35  ;;  %v409_v16 = vsel %vm390_vm0, -inf, %v396_v37  ;;  %v485_v37 = vsel %vm1726_vm15, %v481_v24, -inf  ;;  %vm1764_vm15 = vmand %vm570_vm7, %vm578_vm6 }
 0x125   : > { %v545_v55 = vperm.slane %v485_v37, 0  ;;  %vm1788_vm6 = vmand %vm577_vm8, %vm585_vm9  ;;  %vm527_vm8 = vcmp.eq.s32.totalorder %v387_v27, 63  ;;  %vm2032_vm9 = vcmp.ge.f32.partialorder %v373_v26, 0.7 }
 0x126   : > { %vm1795_vm7 = vmand %vm573_vm12, %vm581_vm13 }
 0x127   : > { %vm588_vm11 = vmand %vm2033_vm10, %vm2032_vm9  ;;  %vm2046_vm10 = vcmp.ge.f32.partialorder %v377_v56, 0.7 }
 0x12b   : > { %v404_v47 = vpop.permute.xlu1 %403  ;;  %v1669_v50 = vpop.permute.xlu0 %401 }
 0x12c   : > { %v413_v38 = vsel %vm390_vm0, -inf, %v404_v47  ;;  %v412_v63 = vsel %vm390_vm0, -inf, %v1669_v50  ;;  %vm1813_vm0 = vmand %vm594_vm5, %vm1764_vm15 }
 0x133   : > { %v423_v10 = vpop.permute.xlu1 %422  ;;  %v421_v15 = vpop.permute.xlu0 %420 }
 0x134   : > { %v435_v14 = vsel %vm415_vm1, -inf, %v423_v10  ;;  %v434_v20 = vsel %vm415_vm1, -inf, %v421_v15 }
 0x135   : > { %v443_v18 = vmax.f32 %v410_v13, %v435_v14  ;;  %v442_v22 = vmax.f32 %v409_v16, %v434_v20  ;;  %v376_v14 = vld [vmem:[%s1577_s8 + $0x28] sm:$0xff]  ;;  %s1101_s8 = scalar_lea.hbm %s2053_s14, 32 }
 0x136   : > { %p1103_p10 = scmp.lt.s32.totalorder %s1101_s8, %s1097_s25 }
 0x137   : > { %v1721_v25 = vmax.f32 %v1609_v6, %v443_v18  ;;  %v450_v29 = vmax.f32 %v1612_v7, %v442_v22 }
 0x138   : > { %p1104_p6 = por %p1103_p10, %p1102_p8 }
 0x139   : > { %v497_v32 = vrot.slane %v1721_v25, 7  ;;  %v531_v33 = vrot.slane %v1721_v25, 1  ;;  %v496_v35 = vrot.slane %v450_v29, 7  ;;  %v530_v36 = vrot.slane %v450_v29, 1 }
 0x13a   : > { %p1105_p9 = pnand %p1104_p6, %p1100_p5 }
 0x13b   : > { %v540_v43 = vsel %vm536_vm4, %v531_v33, %v532_v4  ;;  %v429_v46 = vpop.permute.xlu1 %428  ;;  %v507_v45 = vsel %vm502_vm3, %v496_v35, %v497_v32  ;;  %v508_v48 = vsel %vm502_vm3, %v495_v21, %v496_v35  ;;  %v541_v47 = vsel %vm536_vm4, %v530_v36, %v531_v33  ;;  %v427_v52 = vpop.permute.xlu0 %426 }
 0x13c   : > { %v542_v51 = vsel %vm536_vm4, %v529_v49, %v530_v36  ;;  %v556_v58 = vmax.f32 %v508_v48, %v541_v47  ;;  %v557_v59 = vmax.f32 %v507_v45, %v540_v43  ;;  %v438_v62 = vsel %vm415_vm1, -inf, %v429_v46 }
 0x13d   : > { %v555_v57 = vmax.f32 %v509_v34, %v542_v51  ;;  %v446_v0 = vmax.f32 %v413_v38, %v438_v62  ;;  %v437_v10 = vsel %vm415_vm1, -inf, %v427_v52  ;;  %vm575_vm1 = vcmp.ge.f32.partialorder %v1621_v9, 0.7 }
 0x13e   : > { %v564_v19 = vmax.f32 %v450_v29, %v556_v58  ;;  %v565_v13 = vmax.f32 %v1721_v25, %v557_v59  ;;  %v445_v60 = vmax.f32 %v412_v63, %v437_v10 }
 0x13f   : > { %v563_v50 = vmax.f32 %v1663_v42, %v555_v57  ;;  %v454_v11 = vmax.f32 %v1618_v8, %v446_v0 }
 0x140   : > { %vm596_vm13 = vcmp.eq.f32.partialorder %v1612_v7, %v564_v19  ;;  %vm597_vm2 = vcmp.eq.f32.partialorder %v1609_v6, %v565_v13  ;;  %v453_v15 = vmax.f32 %v1621_v9, %v445_v60  ;;  %v498_v7 = vrot.slane %v1711_v17, 7 }
 0x141   : > { %vm595_vm12 = vcmp.eq.f32.partialorder %v1598_v3, %v563_v50  ;;  %v544_v3 = vsel %vm536_vm4, %v535_v31, %v528_v53  ;;  %v500_v1 = vrot.slane %v454_v11, 7  ;;  %v534_v16 = vrot.slane %v454_v11, 1  ;;  %vm1830_vm5 = vmand %vm596_vm13, %vm588_vm11 }
 0x142   : > { %vm1826_vm9 = vmand %vm595_vm12, %vm1774_vm14  ;;  %v553_v18 = vsel %vm527_vm8, %v545_v55, %v544_v3  ;;  %v499_v21 = vrot.slane %v453_v15, 7  ;;  %v533_v41 = vrot.slane %v453_v15, 1  ;;  %v506_v53 = vsel %vm502_vm3, %v497_v32, %v498_v7 }
 0x143   : > { %vm1838_vm15 = vmand %vm597_vm2, %vm1795_vm7  ;;  %v503_v23 = vsel %vm502_vm3, %v500_v1, %v501_v44  ;;  %v537_v24 = vsel %vm536_vm4, %v534_v16, %v535_v31  ;;  %vm583_vm14 = vcmp.ge.f32.partialorder %v376_v14, 0.7  ;;  %v1217_v44 = vmov 0  }
 0x144   : > { %vm610_vm8 = vmpackc.low %vm1826_vm9, %vm1813_vm0  ;;  %v561_v25 = vmax.f32 %v503_v23, %v553_v18  ;;  %v504_v26 = vsel %vm502_vm3, %v499_v21, %v500_v1  ;;  %v505_v27 = vsel %vm502_vm3, %v498_v7, %v499_v21  ;;  %v538_v28 = vsel %vm536_vm4, %v533_v41, %v534_v16 }
 0x145   : > { %vm611_vm2 = vmpackc.low %vm1838_vm15, %vm1830_vm5  ;;  %v612_v29 = vsel %vm610_vm8, 16711935, %v1217_v44  ;;  %v539_v31 = vsel %vm536_vm4, %v532_v4, %v533_v41  ;;  %v559_v32 = vmax.f32 %v505_v27, %v538_v28  ;;  %v560_v33 = vmax.f32 %v504_v26, %v537_v24 }
 0x146   : > { %vm2042_vm3 = vcmp.ge.f32.partialorder %v1732_v30, 0.7  ;;  %vm2043_vm7 = vcmp.ge.f32.partialorder %v1606_v5, 0.7  ;;  %v613_v35 = vsel %vm611_vm2, 16711935, %v1217_v44  ;;  %v569_v36 = vmax.f32 %v1654_v39, %v561_v25  ;;  %vm591_vm4 = vmand %vm575_vm1, %vm583_vm14 }
 0x147   : > { %vm1871_vm0 = vmand %vm2043_vm7, %vm2042_vm3  ;;  %v558_v37 = vmax.f32 %v506_v53, %v539_v31  ;;  %v614_v38 = vpack.c.b8 %v613_v35, %v612_v29  ;;  %v567_v40 = vmax.f32 %v453_v15, %v559_v32  ;;  %v568_v4 = vmax.f32 %v454_v11, %v560_v33 }
 0x148   : > { %vm2047_vm11 = vcmp.ge.f32.partialorder %v1618_v8, 0.7  ;;  %vm601_vm13 = vcmp.eq.f32.partialorder %v1592_v2, %v569_v36 }
 0x149   : > { %vm1882_vm12 = vmand %vm2047_vm11, %vm2046_vm10  ;;  %v566_v43 = vmax.f32 %v1711_v17, %v558_v37  ;;  %vm615_vm9 = vnez %v614_v38  ;;  %vm599_vm1 = vcmp.eq.f32.partialorder %v1621_v9, %v567_v40  ;;  %vm600_vm15 = vcmp.eq.f32.partialorder %v1618_v8, %v568_v4 }
 0x14a   : > { %vm1891_vm5 = vmand %vm601_vm13, %vm1788_vm6  ;;  %v622_v46 = vsel %vm615_vm9, 16843009, %v1217_v44 }
 0x14b   : > { %vm598_vm14 = vcmp.eq.f32.partialorder %v1606_v5, %v566_v43  ;;  %vm607_vm8 = vmand %vm599_vm1, %vm591_vm4  ;;  %624 = vst [vmem:[%s355_s21] sm:$0xff] %v622_v46 }
 0x14c   : > { %vm606_vm2 = vmand %vm598_vm14, %vm1871_vm0 }
 0x14d   : > { %vm608_vm6 = vmand %vm600_vm15, %vm1882_vm12 }
 0x14e   : > { %vm616_vm3 = vmpackc.low %vm607_vm8, %vm606_vm2 }
 0x14f   : > { %vm617_vm7 = vmpackc.low %vm1891_vm5, %vm608_vm6  ;;  %v618_v2 = vsel %vm616_vm3, 16711935, %v1217_v44 }
 0x150   : > { %v619_v5 = vsel %vm617_vm7, 16711935, %v1217_v44 }
 0x151   : > { %v620_v8 = vpack.c.b8 %v619_v5, %v618_v2 }
 0x153   : > { %vm621_vm0 = vnez %v620_v8 }
 0x154   : > { %v623_v9 = vsel %vm621_vm0, 16843009, %v1217_v44 }
 0x155   : > { %625 = vst [vmem:[%s355_s21 + $0x8] sm:$0xff] %v623_v9 }
 0x156   : > { %1108 = shalt.err (!%p1105_p9)
}
 0x157   : > { %s1218_s20 = smov 128   ;;  %s1219_s23 = smov 8  }
 0x158   : > { %823 = dma.vmem_to_hbm [thread:$0]  (%p2055_p13), %s640_s26, 256, %s642_s24, %s627_s27, %s1218_s20, %s1218_s20, %s1219_s23  }
 0x159 PF: > { %s2056_s16 = sld [smem:[#allocation25_spill]]  ;;  %p2059_p2 = scmp.ge.s32.totalorder %s1209_s12, 2 }
 0x15a   : > { %s2057_s3 = sld [smem:[#allocation31_spill]] }
 0x15f   : > { %s656_s2 = sand.u32 1, %s2056_s16  }
 0x160   : > { %p2058_p11 = scmp.ne.s32.totalorder %s2057_s3, 0  ;;  %s657_s22 = scalar_lea.sflag [#allocation7], %s656_s2 }
 0x162   : > { %p843_p0 = pnand %p2059_p2, %p2058_p11 }
 0x164   : > { %p844_p4 = pneg %p843_p0 }
 0x166   : > { %1168 = dma.done.wait (%p844_p4), %s657_s22, 256  }
 0x167   : > { %1170 = vsyncadd (%p844_p4), %s657_s22, 4294967040  ;;  %s2060_s12 = sld [smem:[#allocation27_spill]]  ;;  %s2066_s0 = smov %s1177_s1 }
 0x168   : > { %s2061_s11 = sld [smem:[#allocation32_spill]]  ;;  %s2067_s1 = smov %s1181_s29 }
 0x169   : > { %s2062_s21 = sld [smem:[#allocation24_spill]]  ;;  %s2069_s30 = smov %s1189_s7 }
 0x16a   : > { %s2063_s8 = sld [smem:[#allocation29_spill]]  ;;  %s2071_s9 = smov %s1201_s10 }
 0x16b   : > { %s2064_s13 = sld [smem:[#allocation26_spill]] }
 0x16c   : > { %s2065_s28 = sld [smem:[#allocation30_spill]] }
 0x16d   : > { %p38_p7 = scmp.ge.s32.totalorder %s2060_s12, 4  }
 0x16e   : > { %s2068_s29 = smov %s2061_s11 }
 0x16f   : > { %s2070_s7 = smov %s2062_s21  ;;  %40 = sbr.rel (!%p38_p7) target bundleno = 21 (0x15), region = 118 }
 0x171   : > { %s2072_s10 = smov %s2064_s13 }
 0x172   : > { %s2073_s11 = smov %s2065_s28 }
 0x174   :  { %663 = vsyncpa [#allocation6], 1 }
 0x175   :  { %665 = vsyncpa [#allocation6 + $0x1], 1 }
 0x176   :  { %666 = vsyncpa [#allocation9], 1 }
 0x177   :  { %668 = vsyncpa [#allocation9 + $0x1], 1 }
 0x178   :  { %669 = vsyncpa [#allocation12], 1 }
 0x179   :  { %671 = vsyncpa [#allocation12 + $0x1], 1 }
 0x17a   :  { %672 = vsyncpa [#allocation7], 1 }
 0x17b   :  { %674 = vsyncpa [#allocation7 + $0x1], 1 }

</bundles_post_ra>
